<compile_context>
chip_gen: v6e
topology: v6e:2x2x1
jax: 0.10.0
libtpu: 0.0.40
codegen_flags: <defaults>
</compile_context>

<pallas_src>
import functools

import jax
import jax.numpy as jnp
from jax.experimental import pallas as pl
from jax.experimental.pallas import tpu as pltpu

LRELU_SLOPE = 0.1


# ---------------------------------------------------------------------------
# In-kernel building blocks (operate on values; channels-on-sublanes layout)
# ---------------------------------------------------------------------------
def _leaky_relu(a):
    return jnp.where(a >= 0.0, a, LRELU_SLOPE * a)


def _pad_cols(x, pad):
    """Zero-pad along the length (lane) axis. x: (C, L) -> (C, L + 2*pad)."""
    if pad == 0:
        return x
    z = jnp.zeros((x.shape[0], pad), x.dtype)
    return jnp.concatenate([z, x, z], axis=1)


def _downsample_cols(x, stride, L_out):
    """Pick columns i*stride (i < L_out) via a tiny selection matmul.

    Avoids strided lane/sublane slicing, which does not lower cleanly.
    x: (C, L_full) -> (C, L_out).
    """
    if stride == 1:
        return x
    L_full = x.shape[1]
    j = jax.lax.broadcasted_iota(jnp.int32, (L_full, L_out), 0)
    i = jax.lax.broadcasted_iota(jnp.int32, (L_full, L_out), 1)
    sel = (j == i * stride).astype(jnp.float32)          # (L_full, L_out)
    return jnp.dot(x, sel, preferred_element_type=jnp.float32)


def _conv_cl(xT, w, b, *, K, stride, pad):
    """Conv1d in (C, L) layout via im2col + a single MXU matmul.

    xT: (C_in, L)   w: (C_out, K*C_in)  [tap-major]   b: (C_out, 1)
    returns (C_out, L_out) in f32.
    """
    xp = _pad_cols(xT, pad)
    L_pad = xp.shape[1]
    L_full = L_pad - K + 1
    if K == 1:
        im2col = xp
    else:
        # (K*C_in, L_full): stack K shifted (contiguous) slices along sublanes.
        im2col = jnp.concatenate([xp[:, k:k + L_full] for k in range(K)], axis=0)
    acc = jnp.dot(w.astype(jnp.float32), im2col.astype(jnp.float32),
                  preferred_element_type=jnp.float32)    # (C_out, L_full)
    L_out = (L_pad - K) // stride + 1
    acc = _downsample_cols(acc, stride, L_out)
    return acc + b.astype(jnp.float32)


def _avgpool_cl(xT, *, K, stride, pad):
    """AvgPool1d (count_include_pad=True, PyTorch default) in (C, L) layout."""
    xp = _pad_cols(xT.astype(jnp.float32), pad)
    L_pad = xp.shape[1]
    L_full = L_pad - K + 1
    acc = xp[:, 0:L_full]
    for k in range(1, K):                                 # K static & small
        acc = acc + xp[:, k:k + L_full]
    acc = acc * (1.0 / K)
    L_out = (L_pad - K) // stride + 1
    return _downsample_cols(acc, stride, L_out)


# ---------------------------------------------------------------------------
# Fused DiscriminatorS kernel: whole layer stack for one batch element
# ---------------------------------------------------------------------------
def _fused_disc_kernel(x_ref, w1_ref, b1_ref, w2_ref, b2_ref, w3_ref, b3_ref,
                       f1_ref, f2_ref, f3_ref, *, cfg):
    """(optional AvgPool1d) -> conv+lrelu -> conv+lrelu -> conv, fmaps in NCL.

    x_ref:  (1, C_in, L)   — channels on sublanes, length on lanes
    f*_ref: (1, C_k, L_k)  — feature map after each conv (pre-LeakyReLU)
    All intermediates stay resident in VMEM/vregs; no HBM round trips.
    """
    x = x_ref[0].astype(jnp.float32)                      # (C_in, L)

    ap = cfg["avgpool"]
    if ap is not None:                                    # leading AvgPool1d
        x = _avgpool_cl(x, K=ap["k"], stride=ap["s"], pad=ap["p"])

    c1 = cfg["conv1"]
    a1 = _conv_cl(x, w1_ref[...], b1_ref[...], K=c1["k"], stride=c1["s"], pad=c1["p"])
    f1_ref[0] = a1.astype(f1_ref.dtype)                   # fmap before activation
    a1 = _leaky_relu(a1)

    c2 = cfg["conv2"]
    a2 = _conv_cl(a1, w2_ref[...], b2_ref[...], K=c2["k"], stride=c2["s"], pad=c2["p"])
    f2_ref[0] = a2.astype(f2_ref.dtype)
    a2 = _leaky_relu(a2)

    c3 = cfg["conv3"]
    a3 = _conv_cl(a2, w3_ref[...], b3_ref[...], K=c3["k"], stride=c3["s"], pad=c3["p"])
    f3_ref[0] = a3.astype(f3_ref.dtype)                   # final activation (NCL)


def _conv_len(L, k, s, p):
    return (L + 2 * p - k) // s + 1


def fused_discriminator_s(x_ncl, params, cfg):
    """Run one whole DiscriminatorS as a single pallas_call.

    x_ncl: (M, C_in, L) in NCL (M = 2*B: y and y_hat batched together).
    Returns (flat_out (M, C_last*L_last), [fmap1, fmap2, fmap3] in NCL).
    """
    M, C_in, L = x_ncl.shape

    Lc = L
    if cfg["avgpool"] is not None:
        ap = cfg["avgpool"]
        Lc = _conv_len(Lc, ap["k"], ap["s"], ap["p"])
    c1, c2, c3 = cfg["conv1"], cfg["conv2"], cfg["conv3"]
    L1 = _conv_len(Lc, c1["k"], c1["s"], c1["p"])
    L2 = _conv_len(L1, c2["k"], c2["s"], c2["p"])
    L3 = _conv_len(L2, c3["k"], c3["s"], c3["p"])
    C1, C2, C3 = c1["c_out"], c2["c_out"], c3["c_out"]

    w1, b1, w2, b2, w3, b3 = params
    dt = x_ncl.dtype
    kernel = functools.partial(_fused_disc_kernel, cfg=cfg)

    f1, f2, f3 = pl.pallas_call(
        kernel,
        out_shape=(
            jax.ShapeDtypeStruct((M, C1, L1), dt),
            jax.ShapeDtypeStruct((M, C2, L2), dt),
            jax.ShapeDtypeStruct((M, C3, L3), dt),
        ),
        grid=(M,),
        in_specs=[
            pl.BlockSpec((1, C_in, L), lambda i: (i, 0, 0)),
            pl.BlockSpec(w1.shape, lambda i: (0, 0)),
            pl.BlockSpec(b1.shape, lambda i: (0, 0)),
            pl.BlockSpec(w2.shape, lambda i: (0, 0)),
            pl.BlockSpec(b2.shape, lambda i: (0, 0)),
            pl.BlockSpec(w3.shape, lambda i: (0, 0)),
            pl.BlockSpec(b3.shape, lambda i: (0, 0)),
        ],
        out_specs=(
            pl.BlockSpec((1, C1, L1), lambda i: (i, 0, 0)),
            pl.BlockSpec((1, C2, L2), lambda i: (i, 0, 0)),
            pl.BlockSpec((1, C3, L3), lambda i: (i, 0, 0)),
        ),
        compiler_params=pltpu.CompilerParams(
            dimension_semantics=("parallel",)),   # shards grid across TCs on v7x
    )(x_ncl, w1, b1, w2, b2, w3, b3)

    # torch.flatten(x, 1, -1) on the final NCL activation: row-major (C, L) flatten.
    flat = f3.reshape(M, C3 * L3)
    return flat, [f1, f2, f3]


def multi_scale_discriminator_forward(discriminators, y_ncl, y_hat_ncl):
    """Mirrors MultiScaleDiscriminator.forward.  y, y_hat: (B, C, L) NCL."""
    B = y_ncl.shape[0]
    # Batch y and y_hat into one leading M = 2*B dim -> one kernel launch per
    # discriminator instead of two full layer chains.
    x = jnp.concatenate([y_ncl, y_hat_ncl], axis=0)
    y_d_rs, y_d_gs, fmap_rs, fmap_gs = [], [], [], []
    for params, cfg in discriminators:
        flat, fmaps = fused_discriminator_s(x, params, cfg)
        y_d_rs.append(flat[:B])
        y_d_gs.append(flat[B:])
        fmap_rs.append([f[:B] for f in fmaps])
        fmap_gs.append([f[B:] for f in fmaps])
    return y_d_rs, y_d_gs, fmap_rs, fmap_gs


# ---------------------------------------------------------------------------
# Deterministic synthetic parameters / configs (representative of the module)
# ---------------------------------------------------------------------------
def _conv_params(key, c_in, c_out, k):
    kw, kb = jax.random.split(key)
    scale = 1.0 / ((c_in * k) ** 0.5)
    w = scale * jax.random.normal(kw, (c_out, k * c_in), jnp.float32)  # tap-major
    b = 0.01 * jax.random.normal(kb, (c_out, 1), jnp.float32)
    return w, b


def build_discriminators(key, c_in):
    # TODO(synk): real configs come from get_module_from_config; this instantiates
    # a representative conv/lrelu/avgpool stack with deterministic weights.
    keys = jax.random.split(key, 6)
    conv_cfg = {
        "conv1": dict(k=5, s=1, p=2, c_out=8),
        "conv2": dict(k=5, s=2, p=2, c_out=16),
        "conv3": dict(k=3, s=1, p=1, c_out=1),
    }
    cfg0 = dict(avgpool=None, **conv_cfg)
    cfg1 = dict(avgpool=dict(k=4, s=2, p=1), **conv_cfg)
    params0 = (*_conv_params(keys[0], c_in, 8, 5),
               *_conv_params(keys[1], 8, 16, 5),
               *_conv_params(keys[2], 16, 1, 3))
    params1 = (*_conv_params(keys[3], c_in, 8, 5),
               *_conv_params(keys[4], 8, 16, 5),
               *_conv_params(keys[5], 16, 1, 3))
    return [(params0, cfg0), (params1, cfg1)]


# ---------------------------------------------------------------------------
if __name__ == "__main__":
    key = jax.random.PRNGKey(0)
    k_param, k_y, k_yh = jax.random.split(key, 3)

    B, C_IN, L = 2, 1, 64                      # small audio-like NCL input
    y = jax.random.normal(k_y, (B, C_IN, L), jnp.float32)
    y_hat = jax.random.normal(k_yh, (B, C_IN, L), jnp.float32)

    discriminators = build_discriminators(k_param, C_IN)

    fwd = jax.jit(
        lambda a, b: multi_scale_discriminator_forward(discriminators, a, b))
    y_d_rs, y_d_gs, fmap_rs, fmap_gs = fwd(y, y_hat)

    for leaf in jax.tree_util.tree_leaves((y_d_rs, y_d_gs, fmap_rs, fmap_gs)):
        jax.block_until_ready(leaf)

    print("KERNEL_OK")
</pallas_src>

<mosaic_0001>
module attributes {stable_mosaic.version = 11 : i64} {
  func.func @_fused_disc_kernel(%arg0: i32, %arg1: memref<1x1x64xf32, #tpu.memory_space<vmem>>, %arg2: memref<8x5xf32, #tpu.memory_space<vmem>>, %arg3: memref<8x1xf32, #tpu.memory_space<vmem>>, %arg4: memref<16x40xf32, #tpu.memory_space<vmem>>, %arg5: memref<16x1xf32, #tpu.memory_space<vmem>>, %arg6: memref<1x48xf32, #tpu.memory_space<vmem>>, %arg7: memref<1x1xf32, #tpu.memory_space<vmem>>, %arg8: memref<1x8x64xf32, #tpu.memory_space<vmem>>, %arg9: memref<1x16x32xf32, #tpu.memory_space<vmem>>, %arg10: memref<1x1x32xf32, #tpu.memory_space<vmem>>) attributes {dimension_semantics = [#tpu.dimension_semantics<parallel>], iteration_bounds = array<i64: 4>, scalar_prefetch = 0 : i64, scratch_operands = 0 : i64, tpu.core_type = #tpu.core_type<tc>, window_params = [{transform_indices = @transform_0, window_bounds = array<i64: 1, 1, 64>}, {pipeline_mode = #tpu.pipeline_mode<synchronous>, transform_indices = @transform_1, window_bounds = array<i64: 8, 5>}, {pipeline_mode = #tpu.pipeline_mode<synchronous>, transform_indices = @transform_2, window_bounds = array<i64: 8, 1>}, {pipeline_mode = #tpu.pipeline_mode<synchronous>, transform_indices = @transform_3, window_bounds = array<i64: 16, 40>}, {pipeline_mode = #tpu.pipeline_mode<synchronous>, transform_indices = @transform_4, window_bounds = array<i64: 16, 1>}, {pipeline_mode = #tpu.pipeline_mode<synchronous>, transform_indices = @transform_5, window_bounds = array<i64: 1, 48>}, {pipeline_mode = #tpu.pipeline_mode<synchronous>, transform_indices = @transform_6, window_bounds = array<i64: 1, 1>}, {transform_indices = @transform_7, window_bounds = array<i64: 1, 8, 64>}, {transform_indices = @transform_8, window_bounds = array<i64: 1, 16, 32>}, {transform_indices = @transform_9, window_bounds = array<i64: 1, 1, 32>}]} {
    %c0 = arith.constant 0 : index
    %c0_0 = arith.constant 0 : index
    %c0_1 = arith.constant 0 : index
    %0 = vector.load %arg1[%c0, %c0_0, %c0_1] : memref<1x1x64xf32, #tpu.memory_space<vmem>>, vector<1x1x64xf32>
    %1 = vector.shape_cast %0 : vector<1x1x64xf32> to vector<1x64xf32>
    %c0_2 = arith.constant 0 : index
    %c0_3 = arith.constant 0 : index
    %2 = vector.load %arg2[%c0_2, %c0_3] : memref<8x5xf32, #tpu.memory_space<vmem>>, vector<8x5xf32>
    %c0_4 = arith.constant 0 : index
    %c0_5 = arith.constant 0 : index
    %3 = vector.load %arg3[%c0_4, %c0_5] : memref<8x1xf32, #tpu.memory_space<vmem>>, vector<8x1xf32>
    %cst = arith.constant 0.000000e+00 : f32
    %4 = vector.broadcast %cst : f32 to vector<1x2xf32>
    %5 = tpu.concatenate %4, %1, %4 in 1 : vector<1x2xf32>, vector<1x64xf32>, vector<1x2xf32> -> vector<1x68xf32>
    %6 = vector.extract_strided_slice %5 {offsets = [0, 0], sizes = [1, 64], strides = [1, 1]} : vector<1x68xf32> to vector<1x64xf32>
    %7 = vector.extract_strided_slice %5 {offsets = [0, 1], sizes = [1, 64], strides = [1, 1]} : vector<1x68xf32> to vector<1x64xf32>
    %8 = vector.extract_strided_slice %5 {offsets = [0, 2], sizes = [1, 64], strides = [1, 1]} : vector<1x68xf32> to vector<1x64xf32>
    %9 = vector.extract_strided_slice %5 {offsets = [0, 3], sizes = [1, 64], strides = [1, 1]} : vector<1x68xf32> to vector<1x64xf32>
    %10 = vector.extract_strided_slice %5 {offsets = [0, 4], sizes = [1, 64], strides = [1, 1]} : vector<1x68xf32> to vector<1x64xf32>
    %11 = tpu.concatenate %6, %7, %8, %9, %10 in 0 : vector<1x64xf32>, vector<1x64xf32>, vector<1x64xf32>, vector<1x64xf32>, vector<1x64xf32> -> vector<5x64xf32>
    %cst_6 = arith.constant dense<0.000000e+00> : vector<8x64xf32>
    %12 = tpu.matmul %2, %11, %cst_6 {dimension_numbers = #tpu.dot_dimension_numbers<[1], [0], [0], [1], [0, 0, 1, 1], [], []>} : vector<8x5xf32>, vector<5x64xf32>, vector<8x64xf32> -> vector<8x64xf32>
    %13 = vector.broadcast %3 : vector<8x1xf32> to vector<8x64xf32>
    %14 = arith.addf %12, %13 : vector<8x64xf32>
    %c0_7 = arith.constant 0 : index
    %c0_8 = arith.constant 0 : index
    %c0_9 = arith.constant 0 : index
    %15 = vector.load %arg8[%c0_7, %c0_8, %c0_9] : memref<1x8x64xf32, #tpu.memory_space<vmem>>, vector<1x8x64xf32>
    %16 = vector.shape_cast %15 : vector<1x8x64xf32> to vector<8x64xf32>
    %17 = vector.shape_cast %14 : vector<8x64xf32> to vector<1x8x64xf32>
    tpu.vector_store %arg8[%c0_7, %c0_8, %c0_9], %17 {strides = array<i32>} : memref<1x8x64xf32, #tpu.memory_space<vmem>>, vector<1x8x64xf32>,
    %cst_10 = arith.constant 0.000000e+00 : f32
    %18 = vector.broadcast %cst_10 : f32 to vector<8x64xf32>
    %19 = arith.cmpf oge, %14, %18 : vector<8x64xf32>
    %cst_11 = arith.constant 1.000000e-01 : f32
    %20 = vector.broadcast %cst_11 : f32 to vector<8x64xf32>
    %21 = arith.mulf %20, %14 : vector<8x64xf32>
    %22 = arith.select %19, %14, %21 : vector<8x64xi1>, vector<8x64xf32>
    %c0_12 = arith.constant 0 : index
    %c0_13 = arith.constant 0 : index
    %23 = vector.load %arg4[%c0_12, %c0_13] : memref<16x40xf32, #tpu.memory_space<vmem>>, vector<16x40xf32>
    %c0_14 = arith.constant 0 : index
    %c0_15 = arith.constant 0 : index
    %24 = vector.load %arg5[%c0_14, %c0_15] : memref<16x1xf32, #tpu.memory_space<vmem>>, vector<16x1xf32>
    %cst_16 = arith.constant 0.000000e+00 : f32
    %25 = vector.broadcast %cst_16 : f32 to vector<8x2xf32>
    %26 = tpu.concatenate %25, %22, %25 in 1 : vector<8x2xf32>, vector<8x64xf32>, vector<8x2xf32> -> vector<8x68xf32>
    %27 = vector.extract_strided_slice %26 {offsets = [0, 0], sizes = [8, 64], strides = [1, 1]} : vector<8x68xf32> to vector<8x64xf32>
    %28 = vector.extract_strided_slice %26 {offsets = [0, 1], sizes = [8, 64], strides = [1, 1]} : vector<8x68xf32> to vector<8x64xf32>
    %29 = vector.extract_strided_slice %26 {offsets = [0, 2], sizes = [8, 64], strides = [1, 1]} : vector<8x68xf32> to vector<8x64xf32>
    %30 = vector.extract_strided_slice %26 {offsets = [0, 3], sizes = [8, 64], strides = [1, 1]} : vector<8x68xf32> to vector<8x64xf32>
    %31 = vector.extract_strided_slice %26 {offsets = [0, 4], sizes = [8, 64], strides = [1, 1]} : vector<8x68xf32> to vector<8x64xf32>
    %32 = tpu.concatenate %27, %28, %29, %30, %31 in 0 : vector<8x64xf32>, vector<8x64xf32>, vector<8x64xf32>, vector<8x64xf32>, vector<8x64xf32> -> vector<40x64xf32>
    %cst_17 = arith.constant dense<0.000000e+00> : vector<16x64xf32>
    %33 = tpu.matmul %23, %32, %cst_17 {dimension_numbers = #tpu.dot_dimension_numbers<[1], [0], [0], [1], [0, 0, 1, 1], [], []>} : vector<16x40xf32>, vector<40x64xf32>, vector<16x64xf32> -> vector<16x64xf32>
    %34 = tpu.iota {dimensions = array<i32: 0>} : vector<64x32xi32>
    %35 = tpu.iota {dimensions = array<i32: 1>} : vector<64x32xi32>
    %c2_i32 = arith.constant 2 : i32
    %36 = vector.broadcast %c2_i32 : i32 to vector<64x32xi32>
    %37 = arith.muli %35, %36 : vector<64x32xi32>
    %38 = arith.cmpi eq, %34, %37 : vector<64x32xi32>
    %39 = arith.extui %38 : vector<64x32xi1> to vector<64x32xi32>
    %40 = arith.sitofp %39 : vector<64x32xi32> to vector<64x32xf32>
    %cst_18 = arith.constant dense<0.000000e+00> : vector<16x32xf32>
    %41 = tpu.matmul %33, %40, %cst_18 {dimension_numbers = #tpu.dot_dimension_numbers<[1], [0], [0], [1], [0, 0, 1, 1], [], []>} : vector<16x64xf32>, vector<64x32xf32>, vector<16x32xf32> -> vector<16x32xf32>
    %42 = vector.broadcast %24 : vector<16x1xf32> to vector<16x32xf32>
    %43 = arith.addf %41, %42 : vector<16x32xf32>
    %c0_19 = arith.constant 0 : index
    %c0_20 = arith.constant 0 : index
    %c0_21 = arith.constant 0 : index
    %44 = vector.load %arg9[%c0_19, %c0_20, %c0_21] : memref<1x16x32xf32, #tpu.memory_space<vmem>>, vector<1x16x32xf32>
    %45 = vector.shape_cast %44 : vector<1x16x32xf32> to vector<16x32xf32>
    %46 = vector.shape_cast %43 : vector<16x32xf32> to vector<1x16x32xf32>
    tpu.vector_store %arg9[%c0_19, %c0_20, %c0_21], %46 {strides = array<i32>} : memref<1x16x32xf32, #tpu.memory_space<vmem>>, vector<1x16x32xf32>,
    %cst_22 = arith.constant 0.000000e+00 : f32
    %47 = vector.broadcast %cst_22 : f32 to vector<16x32xf32>
    %48 = arith.cmpf oge, %43, %47 : vector<16x32xf32>
    %cst_23 = arith.constant 1.000000e-01 : f32
    %49 = vector.broadcast %cst_23 : f32 to vector<16x32xf32>
    %50 = arith.mulf %49, %43 : vector<16x32xf32>
    %51 = arith.select %48, %43, %50 : vector<16x32xi1>, vector<16x32xf32>
    %c0_24 = arith.constant 0 : index
    %c0_25 = arith.constant 0 : index
    %52 = vector.load %arg6[%c0_24, %c0_25] : memref<1x48xf32, #tpu.memory_space<vmem>>, vector<1x48xf32>
    %c0_26 = arith.constant 0 : index
    %c0_27 = arith.constant 0 : index
    %53 = vector.load %arg7[%c0_26, %c0_27] : memref<1x1xf32, #tpu.memory_space<vmem>>, vector<1x1xf32>
    %cst_28 = arith.constant 0.000000e+00 : f32
    %54 = vector.broadcast %cst_28 : f32 to vector<16x1xf32>
    %55 = tpu.concatenate %54, %51, %54 in 1 : vector<16x1xf32>, vector<16x32xf32>, vector<16x1xf32> -> vector<16x34xf32>
    %56 = vector.extract_strided_slice %55 {offsets = [0, 0], sizes = [16, 32], strides = [1, 1]} : vector<16x34xf32> to vector<16x32xf32>
    %57 = vector.extract_strided_slice %55 {offsets = [0, 1], sizes = [16, 32], strides = [1, 1]} : vector<16x34xf32> to vector<16x32xf32>
    %58 = vector.extract_strided_slice %55 {offsets = [0, 2], sizes = [16, 32], strides = [1, 1]} : vector<16x34xf32> to vector<16x32xf32>
    %59 = tpu.concatenate %56, %57, %58 in 0 : vector<16x32xf32>, vector<16x32xf32>, vector<16x32xf32> -> vector<48x32xf32>
    %cst_29 = arith.constant dense<0.000000e+00> : vector<1x32xf32>
    %60 = tpu.matmul %52, %59, %cst_29 {dimension_numbers = #tpu.dot_dimension_numbers<[1], [0], [0], [1], [0, 0, 1, 1], [], []>} : vector<1x48xf32>, vector<48x32xf32>, vector<1x32xf32> -> vector<1x32xf32>
    %61 = vector.broadcast %53 : vector<1x1xf32> to vector<1x32xf32>
    %62 = arith.addf %60, %61 : vector<1x32xf32>
    %c0_30 = arith.constant 0 : index
    %c0_31 = arith.constant 0 : index
    %c0_32 = arith.constant 0 : index
    %63 = vector.load %arg10[%c0_30, %c0_31, %c0_32] : memref<1x1x32xf32, #tpu.memory_space<vmem>>, vector<1x1x32xf32>
    %64 = vector.shape_cast %63 : vector<1x1x32xf32> to vector<1x32xf32>
    %65 = vector.shape_cast %62 : vector<1x32xf32> to vector<1x1x32xf32>
    tpu.vector_store %arg10[%c0_30, %c0_31, %c0_32], %65 {strides = array<i32>} : memref<1x1x32xf32, #tpu.memory_space<vmem>>, vector<1x1x32xf32>,
    return
  }
  func.func @transform_0(%arg0: i32) -> (i32, i32, i32) {
    %c0_i32 = arith.constant 0 : i32
    %c0_i32_0 = arith.constant 0 : i32
    %c0_i32_1 = arith.constant 0 : i32
    return %arg0, %c0_i32, %c0_i32_0 : i32, i32, i32
  }
  func.func @transform_1(%arg0: i32) -> (i32, i32) {
    %c0_i32 = arith.constant 0 : i32
    %c0_i32_0 = arith.constant 0 : i32
    %c0_i32_1 = arith.constant 0 : i32
    return %c0_i32, %c0_i32_0 : i32, i32
  }
  func.func @transform_2(%arg0: i32) -> (i32, i32) {
    %c0_i32 = arith.constant 0 : i32
    %c0_i32_0 = arith.constant 0 : i32
    %c0_i32_1 = arith.constant 0 : i32
    return %c0_i32, %c0_i32_0 : i32, i32
  }
  func.func @transform_3(%arg0: i32) -> (i32, i32) {
    %c0_i32 = arith.constant 0 : i32
    %c0_i32_0 = arith.constant 0 : i32
    %c0_i32_1 = arith.constant 0 : i32
    return %c0_i32, %c0_i32_0 : i32, i32
  }
  func.func @transform_4(%arg0: i32) -> (i32, i32) {
    %c0_i32 = arith.constant 0 : i32
    %c0_i32_0 = arith.constant 0 : i32
    %c0_i32_1 = arith.constant 0 : i32
    return %c0_i32, %c0_i32_0 : i32, i32
  }
  func.func @transform_5(%arg0: i32) -> (i32, i32) {
    %c0_i32 = arith.constant 0 : i32
    %c0_i32_0 = arith.constant 0 : i32
    %c0_i32_1 = arith.constant 0 : i32
    return %c0_i32, %c0_i32_0 : i32, i32
  }
  func.func @transform_6(%arg0: i32) -> (i32, i32) {
    %c0_i32 = arith.constant 0 : i32
    %c0_i32_0 = arith.constant 0 : i32
    %c0_i32_1 = arith.constant 0 : i32
    return %c0_i32, %c0_i32_0 : i32, i32
  }
  func.func @transform_7(%arg0: i32) -> (i32, i32, i32) {
    %c0_i32 = arith.constant 0 : i32
    %c0_i32_0 = arith.constant 0 : i32
    %c0_i32_1 = arith.constant 0 : i32
    return %arg0, %c0_i32, %c0_i32_0 : i32, i32, i32
  }
  func.func @transform_8(%arg0: i32) -> (i32, i32, i32) {
    %c0_i32 = arith.constant 0 : i32
    %c0_i32_0 = arith.constant 0 : i32
    %c0_i32_1 = arith.constant 0 : i32
    return %arg0, %c0_i32, %c0_i32_0 : i32, i32, i32
  }
  func.func @transform_9(%arg0: i32) -> (i32, i32, i32) {
    %c0_i32 = arith.constant 0 : i32
    %c0_i32_0 = arith.constant 0 : i32
    %c0_i32_1 = arith.constant 0 : i32
    return %arg0, %c0_i32, %c0_i32_0 : i32, i32, i32
  }
}

module attributes {stable_mosaic.version = 11 : i64} {
  func.func @_fused_disc_kernel(%arg0: i32, %arg1: memref<1x1x64xf32, #tpu.memory_space<vmem>>, %arg2: memref<8x5xf32, #tpu.memory_space<vmem>>, %arg3: memref<8x1xf32, #tpu.memory_space<vmem>>, %arg4: memref<16x40xf32, #tpu.memory_space<vmem>>, %arg5: memref<16x1xf32, #tpu.memory_space<vmem>>, %arg6: memref<1x48xf32, #tpu.memory_space<vmem>>, %arg7: memref<1x1xf32, #tpu.memory_space<vmem>>, %arg8: memref<1x8x32xf32, #tpu.memory_space<vmem>>, %arg9: memref<1x16x16xf32, #tpu.memory_space<vmem>>, %arg10: memref<1x1x16xf32, #tpu.memory_space<vmem>>) attributes {dimension_semantics = [#tpu.dimension_semantics<parallel>], iteration_bounds = array<i64: 4>, scalar_prefetch = 0 : i64, scratch_operands = 0 : i64, tpu.core_type = #tpu.core_type<tc>, window_params = [{transform_indices = @transform_0, window_bounds = array<i64: 1, 1, 64>}, {pipeline_mode = #tpu.pipeline_mode<synchronous>, transform_indices = @transform_1, window_bounds = array<i64: 8, 5>}, {pipeline_mode = #tpu.pipeline_mode<synchronous>, transform_indices = @transform_2, window_bounds = array<i64: 8, 1>}, {pipeline_mode = #tpu.pipeline_mode<synchronous>, transform_indices = @transform_3, window_bounds = array<i64: 16, 40>}, {pipeline_mode = #tpu.pipeline_mode<synchronous>, transform_indices = @transform_4, window_bounds = array<i64: 16, 1>}, {pipeline_mode = #tpu.pipeline_mode<synchronous>, transform_indices = @transform_5, window_bounds = array<i64: 1, 48>}, {pipeline_mode = #tpu.pipeline_mode<synchronous>, transform_indices = @transform_6, window_bounds = array<i64: 1, 1>}, {transform_indices = @transform_7, window_bounds = array<i64: 1, 8, 32>}, {transform_indices = @transform_8, window_bounds = array<i64: 1, 16, 16>}, {transform_indices = @transform_9, window_bounds = array<i64: 1, 1, 16>}]} {
    %c0 = arith.constant 0 : index
    %c0_0 = arith.constant 0 : index
    %c0_1 = arith.constant 0 : index
    %0 = vector.load %arg1[%c0, %c0_0, %c0_1] : memref<1x1x64xf32, #tpu.memory_space<vmem>>, vector<1x1x64xf32>
    %1 = vector.shape_cast %0 : vector<1x1x64xf32> to vector<1x64xf32>
    %cst = arith.constant 0.000000e+00 : f32
    %2 = vector.broadcast %cst : f32 to vector<1x1xf32>
    %3 = tpu.concatenate %2, %1, %2 in 1 : vector<1x1xf32>, vector<1x64xf32>, vector<1x1xf32> -> vector<1x66xf32>
    %4 = vector.extract_strided_slice %3 {offsets = [0, 0], sizes = [1, 63], strides = [1, 1]} : vector<1x66xf32> to vector<1x63xf32>
    %5 = vector.extract_strided_slice %3 {offsets = [0, 1], sizes = [1, 63], strides = [1, 1]} : vector<1x66xf32> to vector<1x63xf32>
    %6 = arith.addf %4, %5 : vector<1x63xf32>
    %7 = vector.extract_strided_slice %3 {offsets = [0, 2], sizes = [1, 63], strides = [1, 1]} : vector<1x66xf32> to vector<1x63xf32>
    %8 = arith.addf %6, %7 : vector<1x63xf32>
    %9 = vector.extract_strided_slice %3 {offsets = [0, 3], sizes = [1, 63], strides = [1, 1]} : vector<1x66xf32> to vector<1x63xf32>
    %10 = arith.addf %8, %9 : vector<1x63xf32>
    %cst_2 = arith.constant 2.500000e-01 : f32
    %11 = vector.broadcast %cst_2 : f32 to vector<1x63xf32>
    %12 = arith.mulf %10, %11 : vector<1x63xf32>
    %13 = tpu.iota {dimensions = array<i32: 0>} : vector<63x32xi32>
    %14 = tpu.iota {dimensions = array<i32: 1>} : vector<63x32xi32>
    %c2_i32 = arith.constant 2 : i32
    %15 = vector.broadcast %c2_i32 : i32 to vector<63x32xi32>
    %16 = arith.muli %14, %15 : vector<63x32xi32>
    %17 = arith.cmpi eq, %13, %16 : vector<63x32xi32>
    %18 = arith.extui %17 : vector<63x32xi1> to vector<63x32xi32>
    %19 = arith.sitofp %18 : vector<63x32xi32> to vector<63x32xf32>
    %cst_3 = arith.constant dense<0.000000e+00> : vector<1x32xf32>
    %20 = tpu.matmul %12, %19, %cst_3 {dimension_numbers = #tpu.dot_dimension_numbers<[1], [0], [0], [1], [0, 0, 1, 1], [], []>} : vector<1x63xf32>, vector<63x32xf32>, vector<1x32xf32> -> vector<1x32xf32>
    %c0_4 = arith.constant 0 : index
    %c0_5 = arith.constant 0 : index
    %21 = vector.load %arg2[%c0_4, %c0_5] : memref<8x5xf32, #tpu.memory_space<vmem>>, vector<8x5xf32>
    %c0_6 = arith.constant 0 : index
    %c0_7 = arith.constant 0 : index
    %22 = vector.load %arg3[%c0_6, %c0_7] : memref<8x1xf32, #tpu.memory_space<vmem>>, vector<8x1xf32>
    %cst_8 = arith.constant 0.000000e+00 : f32
    %23 = vector.broadcast %cst_8 : f32 to vector<1x2xf32>
    %24 = tpu.concatenate %23, %20, %23 in 1 : vector<1x2xf32>, vector<1x32xf32>, vector<1x2xf32> -> vector<1x36xf32>
    %25 = vector.extract_strided_slice %24 {offsets = [0, 0], sizes = [1, 32], strides = [1, 1]} : vector<1x36xf32> to vector<1x32xf32>
    %26 = vector.extract_strided_slice %24 {offsets = [0, 1], sizes = [1, 32], strides = [1, 1]} : vector<1x36xf32> to vector<1x32xf32>
    %27 = vector.extract_strided_slice %24 {offsets = [0, 2], sizes = [1, 32], strides = [1, 1]} : vector<1x36xf32> to vector<1x32xf32>
    %28 = vector.extract_strided_slice %24 {offsets = [0, 3], sizes = [1, 32], strides = [1, 1]} : vector<1x36xf32> to vector<1x32xf32>
    %29 = vector.extract_strided_slice %24 {offsets = [0, 4], sizes = [1, 32], strides = [1, 1]} : vector<1x36xf32> to vector<1x32xf32>
    %30 = tpu.concatenate %25, %26, %27, %28, %29 in 0 : vector<1x32xf32>, vector<1x32xf32>, vector<1x32xf32>, vector<1x32xf32>, vector<1x32xf32> -> vector<5x32xf32>
    %cst_9 = arith.constant dense<0.000000e+00> : vector<8x32xf32>
    %31 = tpu.matmul %21, %30, %cst_9 {dimension_numbers = #tpu.dot_dimension_numbers<[1], [0], [0], [1], [0, 0, 1, 1], [], []>} : vector<8x5xf32>, vector<5x32xf32>, vector<8x32xf32> -> vector<8x32xf32>
    %32 = vector.broadcast %22 : vector<8x1xf32> to vector<8x32xf32>
    %33 = arith.addf %31, %32 : vector<8x32xf32>
    %c0_10 = arith.constant 0 : index
    %c0_11 = arith.constant 0 : index
    %c0_12 = arith.constant 0 : index
    %34 = vector.load %arg8[%c0_10, %c0_11, %c0_12] : memref<1x8x32xf32, #tpu.memory_space<vmem>>, vector<1x8x32xf32>
    %35 = vector.shape_cast %34 : vector<1x8x32xf32> to vector<8x32xf32>
    %36 = vector.shape_cast %33 : vector<8x32xf32> to vector<1x8x32xf32>
    tpu.vector_store %arg8[%c0_10, %c0_11, %c0_12], %36 {strides = array<i32>} : memref<1x8x32xf32, #tpu.memory_space<vmem>>, vector<1x8x32xf32>,
    %cst_13 = arith.constant 0.000000e+00 : f32
    %37 = vector.broadcast %cst_13 : f32 to vector<8x32xf32>
    %38 = arith.cmpf oge, %33, %37 : vector<8x32xf32>
    %cst_14 = arith.constant 1.000000e-01 : f32
    %39 = vector.broadcast %cst_14 : f32 to vector<8x32xf32>
    %40 = arith.mulf %39, %33 : vector<8x32xf32>
    %41 = arith.select %38, %33, %40 : vector<8x32xi1>, vector<8x32xf32>
    %c0_15 = arith.constant 0 : index
    %c0_16 = arith.constant 0 : index
    %42 = vector.load %arg4[%c0_15, %c0_16] : memref<16x40xf32, #tpu.memory_space<vmem>>, vector<16x40xf32>
    %c0_17 = arith.constant 0 : index
    %c0_18 = arith.constant 0 : index
    %43 = vector.load %arg5[%c0_17, %c0_18] : memref<16x1xf32, #tpu.memory_space<vmem>>, vector<16x1xf32>
    %cst_19 = arith.constant 0.000000e+00 : f32
    %44 = vector.broadcast %cst_19 : f32 to vector<8x2xf32>
    %45 = tpu.concatenate %44, %41, %44 in 1 : vector<8x2xf32>, vector<8x32xf32>, vector<8x2xf32> -> vector<8x36xf32>
    %46 = vector.extract_strided_slice %45 {offsets = [0, 0], sizes = [8, 32], strides = [1, 1]} : vector<8x36xf32> to vector<8x32xf32>
    %47 = vector.extract_strided_slice %45 {offsets = [0, 1], sizes = [8, 32], strides = [1, 1]} : vector<8x36xf32> to vector<8x32xf32>
    %48 = vector.extract_strided_slice %45 {offsets = [0, 2], sizes = [8, 32], strides = [1, 1]} : vector<8x36xf32> to vector<8x32xf32>
    %49 = vector.extract_strided_slice %45 {offsets = [0, 3], sizes = [8, 32], strides = [1, 1]} : vector<8x36xf32> to vector<8x32xf32>
    %50 = vector.extract_strided_slice %45 {offsets = [0, 4], sizes = [8, 32], strides = [1, 1]} : vector<8x36xf32> to vector<8x32xf32>
    %51 = tpu.concatenate %46, %47, %48, %49, %50 in 0 : vector<8x32xf32>, vector<8x32xf32>, vector<8x32xf32>, vector<8x32xf32>, vector<8x32xf32> -> vector<40x32xf32>
    %cst_20 = arith.constant dense<0.000000e+00> : vector<16x32xf32>
    %52 = tpu.matmul %42, %51, %cst_20 {dimension_numbers = #tpu.dot_dimension_numbers<[1], [0], [0], [1], [0, 0, 1, 1], [], []>} : vector<16x40xf32>, vector<40x32xf32>, vector<16x32xf32> -> vector<16x32xf32>
    %53 = tpu.iota {dimensions = array<i32: 0>} : vector<32x16xi32>
    %54 = tpu.iota {dimensions = array<i32: 1>} : vector<32x16xi32>
    %c2_i32_21 = arith.constant 2 : i32
    %55 = vector.broadcast %c2_i32_21 : i32 to vector<32x16xi32>
    %56 = arith.muli %54, %55 : vector<32x16xi32>
    %57 = arith.cmpi eq, %53, %56 : vector<32x16xi32>
    %58 = arith.extui %57 : vector<32x16xi1> to vector<32x16xi32>
    %59 = arith.sitofp %58 : vector<32x16xi32> to vector<32x16xf32>
    %cst_22 = arith.constant dense<0.000000e+00> : vector<16x16xf32>
    %60 = tpu.matmul %52, %59, %cst_22 {dimension_numbers = #tpu.dot_dimension_numbers<[1], [0], [0], [1], [0, 0, 1, 1], [], []>} : vector<16x32xf32>, vector<32x16xf32>, vector<16x16xf32> -> vector<16x16xf32>
    %61 = vector.broadcast %43 : vector<16x1xf32> to vector<16x16xf32>
    %62 = arith.addf %60, %61 : vector<16x16xf32>
    %c0_23 = arith.constant 0 : index
    %c0_24 = arith.constant 0 : index
    %c0_25 = arith.constant 0 : index
    %63 = vector.load %arg9[%c0_23, %c0_24, %c0_25] : memref<1x16x16xf32, #tpu.memory_space<vmem>>, vector<1x16x16xf32>
    %64 = vector.shape_cast %63 : vector<1x16x16xf32> to vector<16x16xf32>
    %65 = vector.shape_cast %62 : vector<16x16xf32> to vector<1x16x16xf32>
    tpu.vector_store %arg9[%c0_23, %c0_24, %c0_25], %65 {strides = array<i32>} : memref<1x16x16xf32, #tpu.memory_space<vmem>>, vector<1x16x16xf32>,
    %cst_26 = arith.constant 0.000000e+00 : f32
    %66 = vector.broadcast %cst_26 : f32 to vector<16x16xf32>
    %67 = arith.cmpf oge, %62, %66 : vector<16x16xf32>
    %cst_27 = arith.constant 1.000000e-01 : f32
    %68 = vector.broadcast %cst_27 : f32 to vector<16x16xf32>
    %69 = arith.mulf %68, %62 : vector<16x16xf32>
    %70 = arith.select %67, %62, %69 : vector<16x16xi1>, vector<16x16xf32>
    %c0_28 = arith.constant 0 : index
    %c0_29 = arith.constant 0 : index
    %71 = vector.load %arg6[%c0_28, %c0_29] : memref<1x48xf32, #tpu.memory_space<vmem>>, vector<1x48xf32>
    %c0_30 = arith.constant 0 : index
    %c0_31 = arith.constant 0 : index
    %72 = vector.load %arg7[%c0_30, %c0_31] : memref<1x1xf32, #tpu.memory_space<vmem>>, vector<1x1xf32>
    %cst_32 = arith.constant 0.000000e+00 : f32
    %73 = vector.broadcast %cst_32 : f32 to vector<16x1xf32>
    %74 = tpu.concatenate %73, %70, %73 in 1 : vector<16x1xf32>, vector<16x16xf32>, vector<16x1xf32> -> vector<16x18xf32>
    %75 = vector.extract_strided_slice %74 {offsets = [0, 0], sizes = [16, 16], strides = [1, 1]} : vector<16x18xf32> to vector<16x16xf32>
    %76 = vector.extract_strided_slice %74 {offsets = [0, 1], sizes = [16, 16], strides = [1, 1]} : vector<16x18xf32> to vector<16x16xf32>
    %77 = vector.extract_strided_slice %74 {offsets = [0, 2], sizes = [16, 16], strides = [1, 1]} : vector<16x18xf32> to vector<16x16xf32>
    %78 = tpu.concatenate %75, %76, %77 in 0 : vector<16x16xf32>, vector<16x16xf32>, vector<16x16xf32> -> vector<48x16xf32>
    %cst_33 = arith.constant dense<0.000000e+00> : vector<1x16xf32>
    %79 = tpu.matmul %71, %78, %cst_33 {dimension_numbers = #tpu.dot_dimension_numbers<[1], [0], [0], [1], [0, 0, 1, 1], [], []>} : vector<1x48xf32>, vector<48x16xf32>, vector<1x16xf32> -> vector<1x16xf32>
    %80 = vector.broadcast %72 : vector<1x1xf32> to vector<1x16xf32>
    %81 = arith.addf %79, %80 : vector<1x16xf32>
    %c0_34 = arith.constant 0 : index
    %c0_35 = arith.constant 0 : index
    %c0_36 = arith.constant 0 : index
    %82 = vector.load %arg10[%c0_34, %c0_35, %c0_36] : memref<1x1x16xf32, #tpu.memory_space<vmem>>, vector<1x1x16xf32>
    %83 = vector.shape_cast %82 : vector<1x1x16xf32> to vector<1x16xf32>
    %84 = vector.shape_cast %81 : vector<1x16xf32> to vector<1x1x16xf32>
    tpu.vector_store %arg10[%c0_34, %c0_35, %c0_36], %84 {strides = array<i32>} : memref<1x1x16xf32, #tpu.memory_space<vmem>>, vector<1x1x16xf32>,
    return
  }
  func.func @transform_0(%arg0: i32) -> (i32, i32, i32) {
    %c0_i32 = arith.constant 0 : i32
    %c0_i32_0 = arith.constant 0 : i32
    %c0_i32_1 = arith.constant 0 : i32
    return %arg0, %c0_i32, %c0_i32_0 : i32, i32, i32
  }
  func.func @transform_1(%arg0: i32) -> (i32, i32) {
    %c0_i32 = arith.constant 0 : i32
    %c0_i32_0 = arith.constant 0 : i32
    %c0_i32_1 = arith.constant 0 : i32
    return %c0_i32, %c0_i32_0 : i32, i32
  }
  func.func @transform_2(%arg0: i32) -> (i32, i32) {
    %c0_i32 = arith.constant 0 : i32
    %c0_i32_0 = arith.constant 0 : i32
    %c0_i32_1 = arith.constant 0 : i32
    return %c0_i32, %c0_i32_0 : i32, i32
  }
  func.func @transform_3(%arg0: i32) -> (i32, i32) {
    %c0_i32 = arith.constant 0 : i32
    %c0_i32_0 = arith.constant 0 : i32
    %c0_i32_1 = arith.constant 0 : i32
    return %c0_i32, %c0_i32_0 : i32, i32
  }
  func.func @transform_4(%arg0: i32) -> (i32, i32) {
    %c0_i32 = arith.constant 0 : i32
    %c0_i32_0 = arith.constant 0 : i32
    %c0_i32_1 = arith.constant 0 : i32
    return %c0_i32, %c0_i32_0 : i32, i32
  }
  func.func @transform_5(%arg0: i32) -> (i32, i32) {
    %c0_i32 = arith.constant 0 : i32
    %c0_i32_0 = arith.constant 0 : i32
    %c0_i32_1 = arith.constant 0 : i32
    return %c0_i32, %c0_i32_0 : i32, i32
  }
  func.func @transform_6(%arg0: i32) -> (i32, i32) {
    %c0_i32 = arith.constant 0 : i32
    %c0_i32_0 = arith.constant 0 : i32
    %c0_i32_1 = arith.constant 0 : i32
    return %c0_i32, %c0_i32_0 : i32, i32
  }
  func.func @transform_7(%arg0: i32) -> (i32, i32, i32) {
    %c0_i32 = arith.constant 0 : i32
    %c0_i32_0 = arith.constant 0 : i32
    %c0_i32_1 = arith.constant 0 : i32
    return %arg0, %c0_i32, %c0_i32_0 : i32, i32, i32
  }
  func.func @transform_8(%arg0: i32) -> (i32, i32, i32) {
    %c0_i32 = arith.constant 0 : i32
    %c0_i32_0 = arith.constant 0 : i32
    %c0_i32_1 = arith.constant 0 : i32
    return %arg0, %c0_i32, %c0_i32_0 : i32, i32, i32
  }
  func.func @transform_9(%arg0: i32) -> (i32, i32, i32) {
    %c0_i32 = arith.constant 0 : i32
    %c0_i32_0 = arith.constant 0 : i32
    %c0_i32_1 = arith.constant 0 : i32
    return %arg0, %c0_i32, %c0_i32_0 : i32, i32, i32
  }
}

</mosaic_0001>

<bundles_post_ra>
// kernel: _lambda_.2
= control target key start
LH: loop header
LB: loop body
LE: loop exit
PB: predicated region body
PF: predicated region fallthrough
CT: control target
= control target key end

     0   :  { %s1425_s0 = inlined_call_operand.vmem [shape: f32[4,1,64], index: 0, kind: input, shape index: {}]   ;;  %s1426_s1 = inlined_call_operand.vmem [shape: f32[8,5], index: 1, kind: input, shape index: {}]   ;;  %s1427_s2 = inlined_call_operand.hbm [shape: f32[8,1], index: 2, kind: input, shape index: {}]   ;;  %s1428_s3 = inlined_call_operand.vmem [shape: f32[16,40], index: 3, kind: input, shape index: {}]   ;;  %s1429_s4 = inlined_call_operand.hbm [shape: f32[16,1], index: 4, kind: input, shape index: {}]   ;;  %s1430_s5 = inlined_call_operand.vmem [shape: f32[1,48], index: 5, kind: input, shape index: {}]   ;;  %s1431_s6 = inlined_call_operand.<no memory space> [shape: f32[1,1], index: 6, kind: input, shape index: {}]   ;;  %s1432_s7 = inlined_call_operand.vmem [shape: f32[4,8,64], index: 7, kind: output, shape index: {0}]   ;;  %s1433_s8 = inlined_call_operand.vmem [shape: f32[4,16,32], index: 8, kind: output, shape index: {1}]   ;;  %s1434_s9 = inlined_call_operand.vmem [shape: f32[4,1,32], index: 9, kind: output, shape index: {2}]  }
   0x1   :  { %v15_v0 = vstv %s1431_s6 }
   0x2   :  { %16 = vst [vmem:[#allocation2] sm:$0x1] %v15_v0 }
   0x3   :  { %17 = vsyncpa [#allocation4], 0 }
   0x4   :  { %18 = vsyncpa [#allocation6], 0  ;;  %s1288_s11 = smov 0  }
   0x5 LB: > { %s1294_s12 = sadd.s32 4294967295, %s1219_s11   ;;  %p992_p0 = scmp.ge.s32.totalorder %s1219_s11, 1  ;;  %s1219_s11 = sphi %s1288_s11, %s24_s11  }
   0x6   : > { %p259_p1 = scmp.lt.s32.totalorder %s1219_s11, 5  ;;  %p1435_p2 = scmp.eq.s32.totalorder %s1294_s12, 0 }
   0x7   : > { %s1221_s6 = smov [#allocation3]   ;;  %s1222_s15 = smov [#allocation5]  }
   0x8   : > { %s275_s13 = sshll.u32 %s1221_s6, 4  ;;  %p1299_p3 = pnand %p992_p0, %p259_p1  ;;  %s276_s13 = int_to_ptr.vmem [resolvable:$true] %s275_s13 }
   0x9   : > { %s288_s16 = sshll.u32 %s1222_s15, 4  ;;  %s1164_s18 = scalar_lea.vmem %s276_s13, 128  ;;  %s289_s16 = int_to_ptr.vmem [resolvable:$true] %s288_s16 }
   0xa   : > { %s1437_s14 = scalar_select %p1299_p3, 1, 0 }
   0xb   : > { %p1118_p4 = pneg %p1299_p3  ;;  %p1165_p7 = scmp.ne.s32.totalorder %s276_s13, %s1164_s18 }
   0xc   : > { %p1172_p10 = scmp.lt.s32.totalorder %s276_s13, %s276_s13  ;;  %p1173_p11 = scmp.lt.s32.totalorder %s1164_s18, %s1164_s18 }
   0xd   : > { %p1307_p5 = pnand %p1435_p2, %p1118_p4 }
   0xe   : > { %p1174_p12 = por %p1173_p11, %p1172_p10 }
   0xf   : > { %p1155_p6 = pneg %p1307_p5 }
  0x11   : > { %p1167_p8 = pnand %p1165_p7, %p1155_p6 }
  0x13   : > { %p1168_p9 = pneg %p1167_p8 }
  0x15   : > { %p1175_p13 = pnand %p1174_p12, %p1168_p9 }
  0x17   : > { %1178 = shalt.err (!%p1175_p13)
}
  0x18   : > { %1121 = dma.hbm_to_vmem [thread:$0]  (!%p1307_p5), %s1427_s2, 128, %s276_s13, [#allocation4]  }
  0x19   : > { %s1190_s21 = scalar_lea.vmem %s289_s16, 256  ;;  %p1198_p7 = scmp.lt.s32.totalorder %s289_s16, %s289_s16 }
  0x1a   : > { %p1191_p0 = scmp.ne.s32.totalorder %s289_s16, %s1190_s21  ;;  %p1199_p8 = scmp.lt.s32.totalorder %s1190_s21, %s1190_s21 }
  0x1c   : > { %p1193_p1 = pnand %p1191_p0, %p1155_p6  ;;  %p1200_p2 = por %p1199_p8, %p1198_p7 }
  0x1e   : > { %p1194_p4 = pneg %p1193_p1 }
  0x20   : > { %p1201_p3 = pnand %p1200_p2, %p1194_p4 }
  0x22   : > { %1204 = shalt.err (!%p1201_p3)
}
  0x23   : > { %s1223_s22 = smov 128   ;;  %s1224_s23 = smov 8  }
  0x24   : > { %1124 = dma.hbm_to_vmem [thread:$0]  (!%p1307_p5), %s1429_s4, 256, %s289_s16, [#allocation6], %s1223_s22, %s1223_s22, %s1224_s23  }
  0x25   : > { %p1439_p9 = scmp.ne.s32.totalorder %s1437_s14, 0 }
  0x26   : > { %p1440_p10 = scmp.eq.s32.totalorder (!%p1439_p9), %s1294_s12, 0 }
  0x27   : > { %316 = sbr.rel (%p1439_p9) target bundleno = 1570 (0x622), region = 48 }
  0x2c   : > { %1210 = dma.done.wait (%p1440_p10), [#allocation4], 128   ;;  %p1441_p6 = pmov %p1440_p10 }
  0x2e   : > { %1212 = vsyncadd (%p1441_p6), [#allocation4], 4294967168  ;;  %p1442_p2 = pmov %p1441_p6 }
  0x30   : > { %1214 = dma.done.wait (%p1442_p2), [#allocation6], 256   ;;  %p1443_p3 = pmov %p1442_p2 }
  0x31   : > { %p361_p11 = scmp.lt.s32.totalorder %s1294_s12, 3  ;;  %s1225_s29 = smov 2   ;;  %v1226_v2 = vmov 0.0   ;;  %vm387_vm0 = vcmask 15360   ;;  %vm1227_vm1 = vmmov 0   ;;  %vm389_vm2 = vcmask 539648  }
  0x32   : > { %1216 = vsyncadd (%p1443_p3), [#allocation6], 4294967040  ;;  %1058 = vmatprep.subr.mxu0 %v1226_v2  ;;  %1060 = vmatprep.mubr.msk.f32.mxu0 %vm1227_vm1, %v1226_v2  ;;  %v1228_v4 = vmov 0   ;;  %s1229_s30 = smov 126   ;;  %s1230_s10 = smov 127   ;;  %v378_v11 = vld [vmem:[#allocation3] sm:$0xff]  ;;  %v609_v31 = vlaneseq }
  0x33   : > { %s1445_s12 = smov (!%p361_p11, %s1294_s12), 3  ;;  %1151 = vset.pattern.permute.xlu1 %v1228_v4  ;;  %1152 = vset.pattern.permute.xlu0 %v1228_v4  ;;  %s1231_s6 = smov 125   ;;  %vm408_vm3 = vcmask 1040384   ;;  %vm410_vm4 = vcmask 1041408   ;;  %vm412_vm5 = vcmask 1042432   ;;  %vm414_vm6 = vcmask 1043456  }
  0x34   : > { %s363_s28 = scalar_lea.vmem %s1425_s0, %s1445_s12  ;;  %s1232_s13 = smov 124   ;;  %vm425_vm7 = vcmask 1044480   ;;  %v377_v19 = vld [vmem:[%s1426_s1] sm:$0xff]  ;;  %vm421_vm8 = vcmask 39936   ;;  %vm499_vm9 = vcmask 523264   ;;  %vm527_vm11 = vcmask 326656  }
  0x35   : > { %v1002_v1 = vld [vmem:[%s363_s28] ss:$0 sm:$0xff]  ;;  %s999_s16 = sshll.u32 %s1445_s12, 3  ;;  %v507_v32 = vld [vmem:[#allocation5 + $0x8] sm:$0xff]  ;;  %v1376_v33 = vshrl.u32 %v609_v31, 7  ;;  %v619_v34 = vand.u32 127, %v609_v31 }
  0x36   : > { %384 = vrot.lane.b32.xlu0 %v1002_v1, %s1225_s29  ;;  %s367_s19 = scalar_lea.vmem %s1432_s7, %s999_s16  ;;  %v504_v27 = vld [vmem:[%s1428_s3] sm:$0xff]  ;;  %v1233_v40 = vmov 1.0   ;;  %v505_v47 = vld [vmem:[%s1428_s3 + $0x8] sm:$0xff]  ;;  %s1031_s24 = sshll.u32 %s1445_s12, 4 }
  0x37   : > { %1073 = vmatprep.mubr.msk.f32.mxu1 %vm527_vm11, %v504_v27  ;;  %v617_v35 = vadd.s32 56, %v1376_v33  ;;  %v620_v36 = vmul.u32 2, %v619_v34  ;;  %v616_v37 = vadd.s32 48, %v1376_v33  ;;  %v615_v38 = vadd.s32 40, %v1376_v33  ;;  %v506_v49 = vld [vmem:[#allocation5] sm:$0xff]  ;;  %s372_s27 = scalar_lea.vmem %s1433_s8, %s1031_s24  ;;  %s1234_s28 = smov 1  }
  0x38   : > { %v614_v39 = vadd.s32 32, %v1376_v33  ;;  %v613_v41 = vadd.s32 24, %v1376_v33  ;;  %v612_v42 = vadd.s32 16, %v1376_v33  ;;  %v611_v48 = vadd.s32 8, %v1376_v33 }
  0x39   : > { %vm628_vm12 = vcmp.eq.s32.totalorder %v617_v35, %v620_v36  ;;  %vm627_vm13 = vcmp.eq.s32.totalorder %v616_v37, %v620_v36  ;;  %vm626_vm14 = vcmp.eq.s32.totalorder %v615_v38, %v620_v36 }
  0x3a   : > { %vm625_vm15 = vcmp.eq.s32.totalorder %v614_v39, %v620_v36 }
  0xa8   : > { %v385_v3 = vpop.permute.xlu0 %384 }
  0xa9   : > { %v388_v5 = vsel %vm387_vm0, 0.0, %v385_v3 }
  0xaa   : > { %v390_v6 = vsel %vm389_vm2, %v388_v5, 0.0  ;;  %v746_v5 = vld [vmem:[#allocation2] sm:$0x1] }
  0xab   : > { %v396_v7 = vrot.slane %v390_v6, 6  ;;  %v392_v8 = vrot.slane %v390_v6, 7  ;;  %v400_v9 = vrot.slane %v390_v6, 5  ;;  %v404_v10 = vrot.slane %v390_v6, 4 }
  0xad   : > { %397 = vrot.lane.b32.xlu1 %v396_v7, %s1229_s30  ;;  %393 = vrot.lane.b32.xlu0 %v392_v8, %s1230_s10 }
  0xb1   : > { %401 = vrot.lane.b32.xlu1 %v400_v9, %s1231_s6  ;;  %405 = vrot.lane.b32.xlu0 %v404_v10, %s1232_s13  ;;  %v745_v10 = vld [vmem:[%s1430_s5] sm:$0x1] }
  0xb5   : > { %418 = vperm.xlu1 %1151, %v378_v11   ;;  %v782_v11 = vsub.s32 0, %v1376_v33 }
 0x11f   : > { %v398_v12 = vpop.permute.xlu1 %397  ;;  %v394_v13 = vpop.permute.xlu0 %393 }
 0x120   : > { %v409_v14 = vsel %vm408_vm3, %v390_v6, %v394_v13  ;;  %vm623_vm3 = vcmp.eq.s32.totalorder %v612_v42, %v620_v36 }
 0x121   : > { %v411_v16 = vsel %vm410_vm4, %v409_v14, %v398_v12  ;;  %vm622_vm4 = vcmp.eq.s32.totalorder %v611_v48, %v620_v36 }
 0x123   : > { %v402_v15 = vpop.permute.xlu1 %401  ;;  %v406_v17 = vpop.permute.xlu0 %405 }
 0x124   : > { %v413_v18 = vsel %vm412_vm5, %v411_v16, %v402_v15  ;;  %vm621_vm5 = vcmp.eq.s32.totalorder %v1376_v33, %v620_v36 }
 0x125   : > { %v415_v20 = vsel %vm414_vm6, %v413_v18, %v406_v17 }
 0x126   : > { %1059 = vmatpush3.msk.msra.mxu0 %vm425_vm7, %v415_v20  ;;  %vm755_vm7 = vcmask 7168  }
 0x127   : > { %1061 = vmatmul.mubr.msk.f32.vlgmr.msra.gmra.mxu0 %vm421_vm8, %v377_v19  ;;  %1076 = vmatprep.subr.msk.mxu0 %vm628_vm12, %v1233_v40  ;;  %vm758_vm8 = vcmask 269312  }
 0x128   : > { %1077 = vmatpush3.msk.msra.mxu0 %vm628_vm12, %v1233_v40 }
 0x129   : > { %1078 = vmatprep.subr.msk.mxu0 %vm627_vm13, %v1233_v40 }
 0x12a   : > { %1079 = vmatpush3.msk.msra.mxu0 %vm627_vm13, %v1233_v40 }
 0x12b   : > { %1080 = vmatprep.subr.msk.mxu0 %vm626_vm14, %v1233_v40 }
 0x12c   : > { %1081 = vmatpush3.msk.msra.mxu0 %vm626_vm14, %v1233_v40 }
 0x12d   : > { %1082 = vmatprep.subr.msk.mxu0 %vm625_vm15, %v1233_v40 }
 0x12e   : > { %1083 = vmatpush3.msk.msra.mxu0 %vm625_vm15, %v1233_v40 }
 0x130   : > { %v419_v21 = vpop.permute.xlu1 %418 }
 0x1e7   : > { %v495_v22 = vpop.f32.mrf.mxu0 }
 0x1e8   : > { %v496_v23 = vadd.f32 %v495_v22, %v419_v21 }
 0x1e9   : > { %v1062_v24 = vpop.f32.mrf.mxu0 }
 0x1ea   : > { %vm501_vm10 = vcmp.ge.f32.partialorder %v496_v23, 0.0  ;;  %v502_v25 = vmul.f32 0.1, %v496_v23  ;;  %500 = vst.msk [vmem:[%s367_s19] sm:$0xff] %vm499_vm9, %v496_v23 }
 0x1ec   : > { %v503_v26 = vsel %vm501_vm10, %v496_v23, %v502_v25  ;;  %vm858_vm10 = vcmask 253952  }
 0x1ed   : > { %509 = vrot.lane.b32.xlu0 %v503_v26, %s1225_s29 }
 0x25f   : > { %v510_v28 = vpop.permute.xlu0 %509 }
 0x260   : > { %v512_v29 = vsel %vm387_vm0, 0.0, %v510_v28  ;;  %vm624_vm0 = vcmp.eq.s32.totalorder %v613_v41, %v620_v36 }
 0x261   : > { %v513_v30 = vsel %vm389_vm2, %v512_v29, 0.0  ;;  %1084 = vmatprep.subr.msk.mxu0 %vm624_vm0, %v1233_v40 }
 0x262   : > { %521 = vrot.lane.b32.xlu0 %v513_v30, %s1231_s6  ;;  %524 = vrot.lane.b32.xlu1 %v513_v30, %s1232_s13  ;;  %s375_s13 = scalar_lea.vmem %s1434_s9, %s1445_s12 }
 0x263   : > { %1085 = vmatpush3.msk.msra.mxu0 %vm624_vm0, %v1233_v40 }
 0x264   : > { %1086 = vmatprep.subr.msk.mxu0 %vm623_vm3, %v1233_v40 }
 0x265   : > { %1087 = vmatpush3.msk.msra.mxu0 %vm623_vm3, %v1233_v40 }
 0x266   : > { %515 = vrot.lane.b32.xlu0 %v513_v30, %s1230_s10  ;;  %518 = vrot.lane.b32.xlu1 %v513_v30, %s1229_s30 }
 0x267   : > { %1088 = vmatprep.subr.msk.mxu0 %vm622_vm4, %v1233_v40 }
 0x268   : > { %1089 = vmatpush3.msk.msra.mxu0 %vm622_vm4, %v1233_v40 }
 0x269   : > { %1090 = vmatprep.subr.msk.mxu0 %vm621_vm5, %v1233_v40 }
 0x26a   : > { %652 = vperm.xlu1 %1151, %v507_v32   ;;  %1091 = vmatpush3.msk.msra.mxu0 %vm621_vm5, %v1233_v40 }
 0x26b   : > { %647 = vperm.xlu0 %1152, %v506_v49  }
 0x2d4   : > { %v522_v43 = vpop.permute.xlu0 %521  ;;  %v525_v44 = vpop.permute.xlu1 %524 }
 0x2d5   : > { %1063 = vmatprep.subr.mxu1 %v525_v44 }
 0x2d6   : > { %1064 = vmatpush3.msra.mxu1 %v525_v44 }
 0x2d7   : > { %1065 = vmatprep.subr.mxu1 %v522_v43 }
 0x2d8   : > { %1066 = vmatpush3.msra.mxu1 %v522_v43  ;;  %v519_v45 = vpop.permute.xlu1 %518  ;;  %v516_v46 = vpop.permute.xlu0 %515 }
 0x2d9   : > { %1067 = vmatprep.subr.mxu1 %v519_v45 }
 0x2da   : > { %1068 = vmatpush3.msra.mxu1 %v519_v45 }
 0x2db   : > { %1069 = vmatprep.subr.mxu1 %v516_v46 }
 0x2dc   : > { %1070 = vmatpush3.msra.mxu1 %v516_v46 }
 0x2dd   : > { %1071 = vmatprep.subr.msk.mxu1 %vm389_vm2, %v512_v29 }
 0x2de   : > { %1072 = vmatpush3.msk.msra.mxu1 %vm389_vm2, %v512_v29 }
 0x2df   : > { %1074 = vmatmul.mubr.msk.f32.vlgmr.msra.gmra.mxu1 %vm527_vm11, %v505_v47  ;;  %1095 = vmatprep.subr.mxu1 %v1226_v2 }
 0x2e0   : > { %1107 = vmatprep.mubr.msk.f32.mxu1 %vm1227_vm1, %v1226_v2  ;;  %vm736_vm1 = vcmask 261120  }
 0x2e5   : > { %v653_v52 = vpop.permute.xlu1 %652 }
 0x2e6   : > { %v648_v54 = vpop.permute.xlu0 %647 }
 0x39f   : > { %v1075_v50 = vpop.f32.mrf.mxu1 }
 0x3a1   : > { %v600_v51 = vpop.f32.mrf.mxu1 }
 0x3a2   : > { %1092 = vmatprep.mubr.msk.f32.mxu0 %vm499_vm9, %v600_v51 }
 0x3a3   : > { %1093 = vmatmul.mubr.msk.f32.vlgmr.msra.gmra.mxu0 %vm499_vm9, %v1075_v50  ;;  %vm784_vm9 = vcmask 392192  }
 0x463   : > { %v1094_v53 = vpop.f32.mrf.mxu0 }
 0x464   : > { %v733_v55 = vadd.f32 %v1094_v53, %v653_v52 }
 0x465   : > { %v727_v56 = vpop.f32.mrf.mxu0 }
 0x466   : > { %738 = vst.msk [vmem:[%s372_s27 + $0x8] sm:$0xff] %vm736_vm1, %v733_v55  ;;  %v728_v57 = vadd.f32 %v727_v56, %v648_v54  ;;  %vm740_vm2 = vcmp.ge.f32.partialorder %v733_v55, 0.0  ;;  %v742_v58 = vmul.f32 0.1, %v733_v55 }
 0x468   : > { %737 = vst.msk [vmem:[%s372_s27] sm:$0xff] %vm736_vm1, %v728_v57  ;;  %v744_v59 = vsel %vm740_vm2, %v733_v55, %v742_v58  ;;  %v741_v60 = vmul.f32 0.1, %v728_v57  ;;  %vm739_vm6 = vcmp.ge.f32.partialorder %v728_v57, 0.0 }
 0x469   : > { %751 = vrot.lane.b32.xlu1 %v744_v59, %s1234_s28 }
 0x46a   : > { %v743_v61 = vsel %vm739_vm6, %v728_v57, %v741_v60 }
 0x46d   : > { %749 = vrot.lane.b32.xlu1 %v743_v61, %s1234_s28 }
 0x4db   : > { %v752_v62 = vpop.permute.xlu1 %751 }
 0x4dc   : > { %v757_v63 = vsel %vm755_vm7, 0.0, %v752_v62 }
 0x4dd   : > { %v760_v0 = vsel %vm758_vm8, %v757_v63, 0.0 }
 0x4de   : > { %771 = vrot.lane.b32.xlu0 %v760_v0, %s1229_s30 }
 0x4df   : > { %v750_v1 = vpop.permute.xlu1 %749 }
 0x4e0   : > { %v756_v3 = vsel %vm755_vm7, 0.0, %v750_v1 }
 0x4e1   : > { %v759_v4 = vsel %vm758_vm8, %v756_v3, 0.0 }
 0x4e2   : > { %765 = vrot.lane.b32.xlu0 %v760_v0, %s1230_s10  ;;  %769 = vrot.lane.b32.xlu1 %v759_v4, %s1229_s30 }
 0x4e6   : > { %777 = vperm.xlu0 %1152, %v746_v5   ;;  %763 = vrot.lane.b32.xlu1 %v759_v4, %s1230_s10 }
 0x550   : > { %v772_v6 = vpop.permute.xlu0 %771 }
 0x551   : > { %1096 = vmatpush3.msra.mxu1 %v772_v6 }
 0x552   : > { %1097 = vmatprep.subr.mxu1 %v1226_v2 }
 0x554   : > { %v770_v7 = vpop.permute.xlu1 %769  ;;  %v766_v8 = vpop.permute.xlu0 %765 }
 0x555   : > { %1098 = vmatpush3.msra.mxu1 %v770_v7 }
 0x556   : > { %1099 = vmatprep.subr.mxu1 %v1226_v2 }
 0x557   : > { %1100 = vmatpush3.msra.mxu1 %v766_v8 }
 0x558   : > { %1101 = vmatprep.subr.mxu1 %v1226_v2  ;;  %v764_v9 = vpop.permute.xlu1 %763 }
 0x559   : > { %1102 = vmatpush3.msra.mxu1 %v764_v9 }
 0x55a   : > { %1103 = vmatprep.subr.mxu1 %v1226_v2 }
 0x55b   : > { %1104 = vmatpush3.msk.msra.mxu1 %vm758_vm8, %v757_v63 }
 0x55c   : > { %1105 = vmatprep.subr.mxu1 %v1226_v2 }
 0x55d   : > { %1106 = vmatpush3.msk.msra.mxu1 %vm758_vm8, %v756_v3 }
 0x55e   : > { %1108 = vmatmul.mubr.msk.f32.vlgmr.msra.gmra.mxu1 %vm784_vm9, %v745_v10 }
 0x561   : > { %v778_v12 = vpop.permute.xlu0 %777 }
 0x562   : > { %v783_v13 = vrot.slane %v778_v12, %v782_v11 }
 0x61e   : > { %v854_v14 = vpop.f32.mrf.mxu1 }
 0x61f   : > { %v855_v15 = vadd.f32 %v854_v14, %v783_v13 }
 0x620   : > { %v1109_v16 = vpop.f32.mrf.mxu1 }
 0x621   : > { %859 = vst.msk [vmem:[%s375_s13] sm:$0x1] %vm858_vm10, %v855_v15 }
 0x622 PF: > { %s24_s11 = sadd.s32 1, %s1219_s11  }
 0x623   : > { %p21_p5 = scmp.ge.s32.totalorder %s24_s11, 6  }
 0x625   :  { %23 = sbr.rel (!%p21_p5) target bundleno = 5 (0x5), region = 111 }
 0x62a   :  { %907 = vsyncpa [#allocation4], 1 }
 0x62b   :  { %909 = vsyncpa [#allocation4 + $0x1], 1 }
 0x62c   :  { %910 = vsyncpa [#allocation6], 1 }

// kernel: _lambda_.3
= control target key start
LH: loop header
LB: loop body
LE: loop exit
PB: predicated region body
PF: predicated region fallthrough
CT: control target
= control target key end

     0   :  { %s1267_s11 = smov 0   ;;  %s1458_s0 = inlined_call_operand.vmem [shape: f32[4,1,64], index: 0, kind: input, shape index: {}]   ;;  %s1459_s1 = inlined_call_operand.vmem [shape: f32[8,5], index: 1, kind: input, shape index: {}]   ;;  %s1460_s2 = inlined_call_operand.vmem [shape: f32[8,1], index: 2, kind: input, shape index: {}]   ;;  %s1461_s3 = inlined_call_operand.vmem [shape: f32[16,40], index: 3, kind: input, shape index: {}]   ;;  %s1462_s4 = inlined_call_operand.vmem [shape: f32[16,1], index: 4, kind: input, shape index: {}]   ;;  %s1463_s5 = inlined_call_operand.vmem [shape: f32[1,48], index: 5, kind: input, shape index: {}]   ;;  %s1464_s6 = inlined_call_operand.<no memory space> [shape: f32[1,1], index: 6, kind: input, shape index: {}]   ;;  %s1465_s7 = inlined_call_operand.vmem [shape: f32[4,8,32], index: 7, kind: output, shape index: {0}]   ;;  %s1466_s8 = inlined_call_operand.vmem [shape: f32[4,16,16], index: 8, kind: output, shape index: {1}]   ;;  %s1467_s9 = inlined_call_operand.vmem [shape: f32[4,1,16], index: 9, kind: output, shape index: {2}]  }
   0x1   :  { %v15_v0 = vstv %s1464_s6 }
   0x2   :  { %16 = vst [vmem:[#allocation2] sm:$0x1] %v15_v0 }
   0x3 LB: > { %s1039_s12 = sadd.s32 4294967295, %s1202_s11   ;;  %p1043_p0 = scmp.ge.s32.totalorder %s1202_s11, 1  ;;  %s1202_s11 = sphi %s1267_s11, %s22_s11  }
   0x4   : > { %p292_p1 = scmp.lt.s32.totalorder %s1202_s11, 5 }
   0x6   : > { %p293_p2 = pnand %p1043_p0, %p292_p1 }
   0x7   : > { %p333_p3 = scmp.lt.s32.totalorder (!%p293_p2), %s1039_s12, 3  ;;  %s1205_s15 = smov (!%p293_p2), 1  }
   0x8   : > { %296 = sbr.rel (%p293_p2) target bundleno = 1965 (0x7ad), region = 48  ;;  %s1208_s16 = smov (!%p293_p2), 126  }
   0x9   : > { %s1209_s17 = smov (!%p293_p2), 127   ;;  %s1210_s18 = smov (!%p293_p2), 125  }
   0xa   : > { %s1211_s19 = smov (!%p293_p2), 2   ;;  %s1213_s20 = smov (!%p293_p2), 124  }
   0xd   : > { %v375_v1 = vlaneseq  ;;  %v1204_v2 = vmov 0.0   ;;  %s1469_s12 = smov (!%p333_p3, %s1039_s12), 3  ;;  %vm415_vm0 = vcmask 1046528   ;;  %v1206_v12 = vmov 1.0   ;;  %v490_v36 = vld [vmem:[%s1460_s2] sm:$0xff]  ;;  %v615_v56 = vld [vmem:[%s1462_s4 + $0x8] sm:$0xff] }
   0xe   : > { %1113 = vmatprep.subr.mxu0 %v1204_v2  ;;  %1132 = vmatprep.subr.mxu1 %v1204_v2  ;;  %s335_s14 = scalar_lea.vmem %s1458_s0, %s1469_s12  ;;  %vm1207_vm9 = vmmov 0   ;;  %vm357_vm10 = vcmask 7168   ;;  %vm359_vm11 = vcmask 531456   ;;  %vm411_vm12 = vcmask 515072   ;;  %v489_v44 = vld [vmem:[%s1459_s1] sm:$0xff]  ;;  %s1044_s25 = sshll.u32 %s1469_s12, 3 }
   0xf   : > { %v1279_v3 = vshrl.u32 %v375_v1, 7  ;;  %v385_v4 = vand.u32 127, %v375_v1  ;;  %v1047_v8 = vld [vmem:[%s335_s14] ss:$0 sm:$0xff]  ;;  %1129 = vmatprep.mubr.msk.f32.mxu0 %vm1207_vm9, %v1204_v2  ;;  %1134 = vmatprep.mubr.msk.f32.mxu1 %vm1207_vm9, %v1204_v2  ;;  %vm495_vm13 = vcmask 15360   ;;  %vm497_vm14 = vcmask 277504   ;;  %s339_s28 = scalar_lea.vmem %s1465_s7, %s1044_s25  ;;  %s347_s25 = scalar_lea.vmem %s1467_s9, %s1469_s12 }
  0x10   : > { %354 = vrot.lane.b32.xlu0 %v1047_v8, %s1205_s15  ;;  %v1212_v29 = vmov 0   ;;  %vm516_vm15 = vcmask 1040384   ;;  %v612_v52 = vld [vmem:[%s1461_s3] sm:$0xff]  ;;  %v613_v61 = vld [vmem:[%s1461_s3 + $0x8] sm:$0xff] }
  0x11   : > { %v383_v5 = vadd.s32 56, %v1279_v3  ;;  %v1286_v6 = vmul.u32 2, %v385_v4  ;;  %v382_v7 = vadd.s32 48, %v1279_v3  ;;  %v381_v9 = vadd.s32 40, %v1279_v3  ;;  %1194 = vset.pattern.permute.xlu1 %v1212_v29  ;;  %1195 = vset.pattern.permute.xlu0 %v1212_v29  ;;  %v614_v62 = vld [vmem:[%s1462_s4] sm:$0xff] }
  0x12   : > { %v380_v11 = vadd.s32 32, %v1279_v3  ;;  %v1305_v13 = vadd.s32 24, %v1279_v3  ;;  %v1310_v14 = vadd.s32 16, %v1279_v3  ;;  %v1320_v15 = vadd.s32 8, %v1279_v3 }
  0x13   : > { %vm394_vm1 = vcmp.eq.s32.totalorder %v383_v5, %v1286_v6  ;;  %vm393_vm2 = vcmp.eq.s32.totalorder %v382_v7, %v1286_v6  ;;  %vm392_vm3 = vcmp.eq.s32.totalorder %v381_v9, %v1286_v6  ;;  %vm387_vm8 = vcmp.eq.s32.totalorder %v1279_v3, %v1286_v6 }
  0x14   : > { %v1055_v10 = vsel %vm394_vm1, 1.0, %v1204_v2  ;;  %vm391_vm4 = vcmp.eq.s32.totalorder %v380_v11, %v1286_v6  ;;  %vm390_vm5 = vcmp.eq.s32.totalorder %v1305_v13, %v1286_v6  ;;  %vm389_vm6 = vcmp.eq.s32.totalorder %v1310_v14, %v1286_v6 }
  0x15   : > { %1114 = vmatpush3.msk.msra.mxu0 %vm415_vm0, %v1055_v10  ;;  %vm388_vm7 = vcmp.eq.s32.totalorder %v1320_v15, %v1286_v6  ;;  %vm518_vm0 = vcmask 1041408   ;;  %vm520_vm1 = vcmask 1042432  }
  0x16   : > { %1115 = vmatprep.subr.mxu0 %v1204_v2 }
  0x17   : > { %1116 = vmatpush3.msk.msra.mxu0 %vm393_vm2, %v1206_v12  ;;  %vm522_vm2 = vcmask 1043456  }
  0x18   : > { %1117 = vmatprep.subr.mxu0 %v1204_v2 }
  0x19   : > { %1118 = vmatpush3.msk.msra.mxu0 %vm392_vm3, %v1206_v12  ;;  %vm533_vm3 = vcmask 1044480  }
  0x1a   : > { %1119 = vmatprep.subr.mxu0 %v1204_v2 }
  0x1b   : > { %1120 = vmatpush3.msk.msra.mxu0 %vm391_vm4, %v1206_v12  ;;  %vm529_vm4 = vcmask 39936  }
  0x1c   : > { %1121 = vmatprep.subr.mxu0 %v1204_v2 }
  0x1d   : > { %1122 = vmatpush3.msk.msra.mxu0 %vm390_vm5, %v1206_v12 }
  0x1e   : > { %1123 = vmatprep.subr.mxu0 %v1204_v2 }
  0x1f   : > { %1124 = vmatpush3.msk.msra.mxu0 %vm389_vm6, %v1206_v12 }
  0x20   : > { %1125 = vmatprep.subr.mxu0 %v1204_v2 }
  0x21   : > { %1126 = vmatpush3.msk.msra.mxu0 %vm388_vm7, %v1206_v12 }
  0x22   : > { %1127 = vmatprep.subr.mxu0 %v1204_v2 }
  0x23   : > { %1128 = vmatpush3.msk.msra.mxu0 %vm387_vm8, %v1206_v12 }
  0x24   : > { %1161 = vmatprep.subr.mxu0 %v1204_v2 }
  0x82   : > { %v355_v16 = vpop.permute.xlu0 %354 }
  0x83   : > { %v358_v17 = vsel %vm357_vm10, 0.0, %v355_v16 }
  0x84   : > { %v360_v18 = vsel %vm359_vm11, %v358_v17, 0.0 }
  0x85   : > { %366 = vrot.lane.b32.xlu1 %v360_v18, %s1208_s16  ;;  %362 = vrot.lane.b32.xlu0 %v360_v18, %s1209_s17 }
  0x89   : > { %370 = vrot.lane.b32.xlu1 %v360_v18, %s1210_s18 }
  0xf7   : > { %v367_v19 = vpop.permute.xlu1 %366  ;;  %v363_v20 = vpop.permute.xlu0 %362 }
  0xf8   : > { %v365_v21 = vadd.f32 %v363_v20, %v360_v18 }
  0xfa   : > { %v369_v22 = vadd.f32 %v367_v19, %v365_v21  ;;  %v818_v19 = vld [vmem:[#allocation2] sm:$0x1] }
  0xfb   : > { %v371_v23 = vpop.permute.xlu1 %370 }
  0xfc   : > { %v373_v24 = vadd.f32 %v371_v23, %v369_v22 }
  0xfe   : > { %v374_v25 = vmul.f32 0.25, %v373_v24  ;;  %v817_v24 = vld [vmem:[%s1463_s5] sm:$0x1] }
 0x100   : > { %1130 = vmatmul.mubr.msk.f32.vlgmr.msra.gmra.mxu0 %vm411_vm12, %v374_v25  ;;  %vm635_vm12 = vcmask 326656   ;;  %v853_v25 = vsub.s32 0, %v1279_v3 }
 0x101   : > { %1173 = vmatprep.mubr.msk.f32.mxu0 %vm1207_vm9, %v1204_v2  ;;  %vm607_vm9 = vcmask 261120  }
 0x1c0   : > { %v485_v26 = vpop.f32.mrf.mxu0 }
 0x1c1   : > { %492 = vrot.lane.b32.xlu0 %v485_v26, %s1211_s19 }
 0x1c2   : > { %v1131_v27 = vpop.f32.mrf.mxu0 }
 0x233   : > { %v493_v28 = vpop.permute.xlu0 %492 }
 0x234   : > { %v496_v30 = vsel %vm495_vm13, 0.0, %v493_v28 }
 0x235   : > { %v498_v31 = vsel %vm497_vm14, %v496_v30, 0.0 }
 0x236   : > { %v504_v32 = vrot.slane %v498_v31, 6  ;;  %v500_v33 = vrot.slane %v498_v31, 7  ;;  %v512_v34 = vrot.slane %v498_v31, 4  ;;  %v508_v35 = vrot.slane %v498_v31, 5 }
 0x238   : > { %505 = vrot.lane.b32.xlu0 %v504_v32, %s1208_s16  ;;  %501 = vrot.lane.b32.xlu1 %v500_v33, %s1209_s17 }
 0x23c   : > { %513 = vrot.lane.b32.xlu0 %v512_v34, %s1213_s20  ;;  %509 = vrot.lane.b32.xlu1 %v508_v35, %s1210_s18 }
 0x240   : > { %526 = vperm.xlu1 %1194, %v490_v36  }
 0x2aa   : > { %v506_v37 = vpop.permute.xlu0 %505  ;;  %v502_v38 = vpop.permute.xlu1 %501 }
 0x2ab   : > { %v517_v39 = vsel %vm516_vm15, %v498_v31, %v502_v38 }
 0x2ac   : > { %v519_v41 = vsel %vm518_vm0, %v517_v39, %v506_v37 }
 0x2ae   : > { %v514_v40 = vpop.permute.xlu0 %513  ;;  %v510_v42 = vpop.permute.xlu1 %509 }
 0x2af   : > { %v521_v43 = vsel %vm520_vm1, %v519_v41, %v510_v42 }
 0x2b0   : > { %v523_v45 = vsel %vm522_vm2, %v521_v43, %v514_v40 }
 0x2b1   : > { %1133 = vmatpush3.msk.msra.mxu1 %vm533_vm3, %v523_v45 }
 0x2b2   : > { %1135 = vmatmul.mubr.msk.f32.vlgmr.msra.gmra.mxu1 %vm529_vm4, %v489_v44 }
 0x2b3   : > { %1147 = vmatprep.mubr.msk.f32.mxu1 %vm635_vm12, %v612_v52 }
 0x2bb   : > { %v527_v46 = vpop.permute.xlu1 %526 }
 0x372   : > { %v603_v47 = vpop.f32.mrf.mxu1 }
 0x373   : > { %v604_v48 = vadd.f32 %v603_v47, %v527_v46 }
 0x374   : > { %v1136_v49 = vpop.f32.mrf.mxu1 }
 0x375   : > { %vm609_vm11 = vcmp.ge.f32.partialorder %v604_v48, 0.0  ;;  %v610_v50 = vmul.f32 0.1, %v604_v48  ;;  %608 = vst.msk [vmem:[%s339_s28] sm:$0xff] %vm607_vm9, %v604_v48 }
 0x377   : > { %v611_v51 = vsel %vm609_vm11, %v604_v48, %v610_v50 }
 0x378   : > { %617 = vrot.lane.b32.xlu0 %v611_v51, %s1211_s19 }
 0x3ea   : > { %v618_v53 = vpop.permute.xlu0 %617 }
 0x3eb   : > { %v620_v54 = vsel %vm495_vm13, 0.0, %v618_v53  ;;  %vm929_vm13 = vcmask 122880  }
 0x3ec   : > { %v621_v55 = vsel %vm497_vm14, %v620_v54, 0.0 }
 0x3ed   : > { %629 = vrot.lane.b32.xlu0 %v621_v55, %s1210_s18  ;;  %632 = vrot.lane.b32.xlu1 %v621_v55, %s1213_s20  ;;  %s1081_s20 = sshll.u32 %s1469_s12, 4 }
 0x3ee   : > { %s344_s23 = scalar_lea.vmem %s1466_s8, %s1081_s20 }
 0x3f1   : > { %623 = vrot.lane.b32.xlu0 %v621_v55, %s1209_s17  ;;  %626 = vrot.lane.b32.xlu1 %v621_v55, %s1208_s16 }
 0x3f5   : > { %724 = vperm.xlu1 %1194, %v615_v56   ;;  %719 = vperm.xlu0 %1195, %v614_v62  }
 0x45f   : > { %v630_v57 = vpop.permute.xlu0 %629  ;;  %v633_v58 = vpop.permute.xlu1 %632 }
 0x460   : > { %1137 = vmatprep.subr.mxu1 %v633_v58 }
 0x461   : > { %1138 = vmatpush3.msra.mxu1 %v633_v58 }
 0x462   : > { %1139 = vmatprep.subr.mxu1 %v630_v57 }
 0x463   : > { %1140 = vmatpush3.msra.mxu1 %v630_v57  ;;  %v627_v59 = vpop.permute.xlu1 %626  ;;  %v624_v60 = vpop.permute.xlu0 %623 }
 0x464   : > { %1141 = vmatprep.subr.mxu1 %v627_v59 }
 0x465   : > { %1142 = vmatpush3.msra.mxu1 %v627_v59 }
 0x466   : > { %1143 = vmatprep.subr.mxu1 %v624_v60 }
 0x467   : > { %1144 = vmatpush3.msra.mxu1 %v624_v60 }
 0x468   : > { %1145 = vmatprep.subr.msk.mxu1 %vm497_vm14, %v620_v54 }
 0x469   : > { %1146 = vmatpush3.msk.msra.mxu1 %vm497_vm14, %v620_v54 }
 0x46a   : > { %1148 = vmatmul.mubr.msk.f32.vlgmr.msra.gmra.mxu1 %vm635_vm12, %v613_v61  ;;  %1150 = vmatprep.subr.msk.mxu1 %vm390_vm5, %v1206_v12 }
 0x46b   : > { %1151 = vmatpush3.msk.msra.mxu1 %vm390_vm5, %v1206_v12  ;;  %vm808_vm5 = vcmask 130048  }
 0x46c   : > { %1152 = vmatprep.subr.msk.mxu1 %vm389_vm6, %v1206_v12 }
 0x46d   : > { %1153 = vmatpush3.msk.msra.mxu1 %vm389_vm6, %v1206_v12 }
 0x46e   : > { %1154 = vmatprep.subr.msk.mxu1 %vm388_vm7, %v1206_v12 }
 0x46f   : > { %1155 = vmatpush3.msk.msra.mxu1 %vm388_vm7, %v1206_v12 }
 0x470   : > { %1156 = vmatprep.subr.msk.mxu1 %vm387_vm8, %v1206_v12  ;;  %v725_v1 = vpop.permute.xlu1 %724  ;;  %v720_v5 = vpop.permute.xlu0 %719 }
 0x471   : > { %1157 = vmatpush3.msk.msra.mxu1 %vm387_vm8, %v1206_v12  ;;  %vm829_vm8 = vcmask 138240  }
 0x52a   : > { %v1149_v63 = vpop.f32.mrf.mxu1 }
 0x52c   : > { %v708_v0 = vpop.f32.mrf.mxu1 }
 0x52d   : > { %1158 = vmatprep.mubr.msk.f32.mxu1 %vm607_vm9, %v708_v0 }
 0x52e   : > { %1159 = vmatmul.mubr.msk.f32.vlgmr.msra.gmra.mxu1 %vm607_vm9, %v1149_v63 }
 0x5ee   : > { %v1160_v4 = vpop.f32.mrf.mxu1 }
 0x5ef   : > { %v805_v6 = vadd.f32 %v1160_v4, %v725_v1 }
 0x5f0   : > { %v799_v7 = vpop.f32.mrf.mxu1 }
 0x5f1   : > { %810 = vst.msk [vmem:[%s344_s23 + $0x8] sm:$0xff] %vm808_vm5, %v805_v6  ;;  %v800_v8 = vadd.f32 %v799_v7, %v720_v5  ;;  %vm812_vm6 = vcmp.ge.f32.partialorder %v805_v6, 0.0  ;;  %v814_v9 = vmul.f32 0.1, %v805_v6 }
 0x5f3   : > { %809 = vst.msk [vmem:[%s344_s23] sm:$0xff] %vm808_vm5, %v800_v8  ;;  %v816_v10 = vsel %vm812_vm6, %v805_v6, %v814_v9  ;;  %v813_v11 = vmul.f32 0.1, %v800_v8  ;;  %vm811_vm7 = vcmp.ge.f32.partialorder %v800_v8, 0.0 }
 0x5f4   : > { %823 = vrot.lane.b32.xlu1 %v816_v10, %s1205_s15 }
 0x5f5   : > { %v815_v12 = vsel %vm811_vm7, %v800_v8, %v813_v11 }
 0x5f8   : > { %821 = vrot.lane.b32.xlu1 %v815_v12, %s1205_s15 }
 0x666   : > { %v824_v13 = vpop.permute.xlu1 %823 }
 0x667   : > { %v828_v14 = vsel %vm357_vm10, 0.0, %v824_v13 }
 0x668   : > { %v831_v15 = vsel %vm829_vm8, %v828_v14, 0.0 }
 0x669   : > { %842 = vrot.lane.b32.xlu0 %v831_v15, %s1208_s16 }
 0x66a   : > { %v822_v16 = vpop.permute.xlu1 %821 }
 0x66b   : > { %v827_v17 = vsel %vm357_vm10, 0.0, %v822_v16  ;;  %vm855_vm10 = vcmask 392192  }
 0x66c   : > { %v830_v18 = vsel %vm829_vm8, %v827_v17, 0.0 }
 0x66d   : > { %836 = vrot.lane.b32.xlu0 %v831_v15, %s1209_s17  ;;  %840 = vrot.lane.b32.xlu1 %v830_v18, %s1208_s16 }
 0x671   : > { %848 = vperm.xlu0 %1195, %v818_v19   ;;  %834 = vrot.lane.b32.xlu1 %v830_v18, %s1209_s17 }
 0x6db   : > { %v843_v20 = vpop.permute.xlu0 %842 }
 0x6dc   : > { %1162 = vmatpush3.msra.mxu0 %v843_v20 }
 0x6dd   : > { %1163 = vmatprep.subr.mxu0 %v1204_v2 }
 0x6df   : > { %v841_v21 = vpop.permute.xlu1 %840  ;;  %v837_v22 = vpop.permute.xlu0 %836 }
 0x6e0   : > { %1164 = vmatpush3.msra.mxu0 %v841_v21 }
 0x6e1   : > { %1165 = vmatprep.subr.mxu0 %v1204_v2 }
 0x6e2   : > { %1166 = vmatpush3.msra.mxu0 %v837_v22 }
 0x6e3   : > { %1167 = vmatprep.subr.mxu0 %v1204_v2  ;;  %v835_v23 = vpop.permute.xlu1 %834 }
 0x6e4   : > { %1168 = vmatpush3.msra.mxu0 %v835_v23 }
 0x6e5   : > { %1169 = vmatprep.subr.mxu0 %v1204_v2 }
 0x6e6   : > { %1170 = vmatpush3.msk.msra.mxu0 %vm829_vm8, %v828_v14 }
 0x6e7   : > { %1171 = vmatprep.subr.mxu0 %v1204_v2 }
 0x6e8   : > { %1172 = vmatpush3.msk.msra.mxu0 %vm829_vm8, %v827_v17 }
 0x6e9   : > { %1174 = vmatmul.mubr.msk.f32.vlgmr.msra.gmra.mxu0 %vm855_vm10, %v817_v24 }
 0x6ec   : > { %v849_v26 = vpop.permute.xlu0 %848 }
 0x6ed   : > { %v854_v27 = vrot.slane %v849_v26, %v853_v25 }
 0x7a9   : > { %v925_v28 = vpop.f32.mrf.mxu0 }
 0x7aa   : > { %v926_v29 = vadd.f32 %v925_v28, %v854_v27 }
 0x7ab   : > { %v1175_v30 = vpop.f32.mrf.mxu0 }
 0x7ac   : > { %930 = vst.msk [vmem:[%s347_s25] sm:$0x1] %vm929_vm13, %v926_v29 }
 0x7ad PF: > { %s22_s11 = sadd.s32 1, %s1202_s11  }
 0x7ae   : > { %p19_p4 = scmp.ge.s32.totalorder %s22_s11, 6  }
 0x7b0   :  { %21 = sbr.rel (!%p19_p4) target bundleno = 3 (0x3), region = 102 }

</bundles_post_ra>
